<compile_context>
chip_gen: v5e
topology: v5e:2x2
jax: 0.10.0
libtpu: 0.0.40
codegen_flags: <defaults>
</compile_context>

<pallas_src>
import jax
import jax.numpy as jnp
from jax.experimental import pallas as pl
from jax.experimental.pallas import tpu as pltpu


def _cross_modal_kernel(text_ref, img_ref, beh_ref, wt_ref, wi_ref, wb_ref,
                        bias_ref, scales_ref,
                        text_w_ref, img_w_ref, beh_w_ref, weights_ref):
    text = text_ref[...]
    img = img_ref[...]
    beh = beh_ref[...]

    # Logits on the MXU: (TB, H) @ (H, 3) per modality, f32 accumulation.
    # Modality scales are already folded into wt/wi/wb by the wrapper, so
    # these dots directly reproduce Linear(cat([s_t*t, s_i*i, s_b*b])).
    logits = (jnp.dot(text, wt_ref[...], preferred_element_type=jnp.float32)
              + jnp.dot(img, wi_ref[...], preferred_element_type=jnp.float32)
              + jnp.dot(beh, wb_ref[...], preferred_element_type=jnp.float32)
              + bias_ref[...])

    # Stable softmax over the 3 modality logits (dim=1 in the PyTorch module).
    mx = jnp.max(logits, axis=-1, keepdims=True)
    e = jnp.exp(logits - mx)
    inv = pl.reciprocal(jnp.sum(e, axis=-1, keepdims=True), approx=True)
    weights = e * inv
    weights_ref[...] = weights.astype(weights_ref.dtype)

    # Outputs: (scale * modality) * softmax column.  The scale is folded into
    # the (TB, 1) column multiplier so no scaled (TB, H) copies stay live.
    s_t = scales_ref[0]
    s_i = scales_ref[1]
    s_b = scales_ref[2]
    text_w_ref[...] = (text * (weights[:, 0:1] * s_t)).astype(text_w_ref.dtype)
    img_w_ref[...] = (img * (weights[:, 1:2] * s_i)).astype(img_w_ref.dtype)
    beh_w_ref[...] = (beh * (weights[:, 2:3] * s_b)).astype(beh_w_ref.dtype)


def _round_up(x, m):
    return ((x + m - 1) // m) * m


def _vmem_limit_bytes():
    # ~75% of physical VMEM: 96 MiB on v5e/v6e (128 MiB), 48 MiB on v7x (64 MiB).
    try:
        cap = int(pltpu.get_tpu_info().vmem_capacity_bytes)
    except Exception:
        cap = 64 * 1024 * 1024
    return min((cap * 3) // 4, 96 * 1024 * 1024)


def _choose_block_b(B, H, itemsize, vmem_limit):
    # Working set: 6 streamed (TB, H) arrays (3 in + 3 out), double-buffered,
    # plus the double-buffered (TB, 3) weights block; the resident (H, 3)
    # weight slabs and bias are noise.  Keep ~25% headroom under the limit.
    budget = (vmem_limit * 3) // 4
    bytes_per_row = 12 * H * itemsize + 2 * 3 * 4
    tb = max(8, (budget // bytes_per_row) // 8 * 8)
    tb = min(tb, 2048)
    # Guarantee >= 2 grid steps when the batch allows it, so v7x's 2 TCs both
    # get work and DMA/compute overlap actually happens.
    if B > 8:
        tb = min(tb, _round_up((B + 1) // 2, 8))
    tb = min(tb, _round_up(B, 8))
    return max(tb, 8)


def cross_modal_attention(text, img, behavior, w, b, scales, *, block_b=None):
    """Pallas CrossModalAttention forward.

    Args:
      text, img, behavior: (B, H) arrays.
      w: (3, 3H) Linear weight (torch layout, rows = output logits).
      b: (3,) Linear bias.
      scales: (3,) f32 = [text_weight_bias, img_weight_bias, behavior_weight_bias].
      block_b: optional batch tile size (rounded up to a multiple of 8).
    Returns:
      (text_weighted, img_weighted, behavior_weighted, weights)
    """
    B, H = text.shape
    assert w.shape == (3, 3 * H)
    itemsize = jnp.dtype(text.dtype).itemsize
    vmem_limit = _vmem_limit_bytes()

    scales = scales.astype(jnp.float32)
    # Per-modality (H, 3) weight slabs with the modality scale folded in, so
    # the kernel's MXU dots on the *unscaled* inputs reproduce the reference
    # logits exactly.
    w_t = (w[:, 0:H] * scales[0]).T.astype(jnp.float32)
    w_i = (w[:, H:2 * H] * scales[1]).T.astype(jnp.float32)
    w_b = (w[:, 2 * H:3 * H] * scales[2]).T.astype(jnp.float32)
    bias2d = b.reshape(1, 3).astype(jnp.float32)

    if block_b is None:
        block_b = _choose_block_b(B, H, itemsize, vmem_limit)
    block_b = _round_up(block_b, 8)
    grid = (pl.cdiv(B, block_b),)

    row_spec = pl.BlockSpec((block_b, H), lambda i: (i, 0))
    w_spec = pl.BlockSpec((H, 3), lambda i: (0, 0))        # resident, constant block
    bias_spec = pl.BlockSpec((1, 3), lambda i: (0, 0))     # resident, constant block
    smem_spec = pl.BlockSpec(memory_space=pltpu.MemorySpace.SMEM)

    out_shapes = (
        jax.ShapeDtypeStruct((B, H), text.dtype),      # text_weighted
        jax.ShapeDtypeStruct((B, H), img.dtype),       # img_weighted
        jax.ShapeDtypeStruct((B, H), behavior.dtype),  # behavior_weighted
        jax.ShapeDtypeStruct((B, 3), jnp.float32),     # softmax weights
    )
    out_specs = (
        row_spec,
        row_spec,
        row_spec,
        pl.BlockSpec((block_b, 3), lambda i: (i, 0)),
    )

    cost = pl.CostEstimate(
        flops=int(21 * B * H + 30 * B),          # 3 MXU dots + output scaling + softmax
        transcendentals=int(4 * B),              # 3 exps + 1 reciprocal per row
        bytes_accessed=int(6 * B * H * itemsize + 4 * 3 * B + 4 * (9 * H + 3)),
    )

    return pl.pallas_call(
        _cross_modal_kernel,
        out_shape=out_shapes,
        grid=grid,
        in_specs=[row_spec, row_spec, row_spec, w_spec, w_spec, w_spec,
                  bias_spec, smem_spec],
        out_specs=out_specs,
        compiler_params=pltpu.CompilerParams(
            dimension_semantics=("parallel",),
            vmem_limit_bytes=vmem_limit,
        ),
        cost_estimate=cost,
    )(text, img, behavior, w_t, w_i, w_b, bias2d, scales)


def _reference(text, img, behavior, w, b, scales):
    t = text * scales[0]
    i = img * scales[1]
    bh = behavior * scales[2]
    combined = jnp.concatenate([t, i, bh], axis=1)
    logits = combined @ w.T + b
    weights = jax.nn.softmax(logits, axis=1)
    return (t * weights[:, 0:1], i * weights[:, 1:2], bh * weights[:, 2:3], weights)


def _check(outs, refs, tol=2e-3):
    for o, r in zip(outs, refs):
        assert o.shape == r.shape, (o.shape, r.shape)
        assert jnp.allclose(o, r, atol=tol, rtol=tol), float(jnp.max(jnp.abs(o - r)))


if __name__ == "__main__":
    key = jax.random.PRNGKey(0)
    k_text, k_img, k_beh, k_w, k_b = jax.random.split(key, 5)

    H = 32  # small hidden for the test (module default hidden_dim=256)

    # nn.Linear(hidden*3, 3): weight (3, 3H), bias (3,). Deterministic init.
    bound = 1.0 / jnp.sqrt(3.0 * H)
    w = jax.random.uniform(k_w, (3, 3 * H), minval=-bound, maxval=bound,
                           dtype=jnp.float32)
    b = jax.random.uniform(k_b, (3,), minval=-bound, maxval=bound,
                           dtype=jnp.float32)
    # [text_weight_bias, img_weight_bias, behavior_weight_bias] (torch init = 1.0;
    # non-trivial values so the scaling path is actually exercised)
    scales = jnp.array([1.1, 0.9, 1.25], dtype=jnp.float32)

    # Test 1: single-tile grid (B == block).
    B = 8
    text = jax.random.normal(k_text, (B, H), dtype=jnp.float32)
    img = jax.random.normal(k_img, (B, H), dtype=jnp.float32)
    behavior = jax.random.normal(k_beh, (B, H), dtype=jnp.float32)

    outs = cross_modal_attention(text, img, behavior, w, b, scales)
    outs = jax.block_until_ready(outs)
    _check(outs, _reference(text, img, behavior, w, b, scales))

    # Test 2: explicit multi-step batch grid (tiling / pipelining path).
    B2 = 48
    k_t2, k_i2, k_b2 = jax.random.split(jax.random.PRNGKey(1), 3)
    text2 = jax.random.normal(k_t2, (B2, H), dtype=jnp.float32)
    img2 = jax.random.normal(k_i2, (B2, H), dtype=jnp.float32)
    behavior2 = jax.random.normal(k_b2, (B2, H), dtype=jnp.float32)

    outs2 = cross_modal_attention(text2, img2, behavior2, w, b, scales, block_b=16)
    outs2 = jax.block_until_ready(outs2)
    _check(outs2, _reference(text2, img2, behavior2, w, b, scales))

    # Test 3: auto block_b with a partial last block (masked writeback path,
    # and the >=2-grid-step / 2-TensorCore sizing logic).
    B3 = 20
    k_t3, k_i3, k_b3 = jax.random.split(jax.random.PRNGKey(2), 3)
    text3 = jax.random.normal(k_t3, (B3, H), dtype=jnp.float32)
    img3 = jax.random.normal(k_i3, (B3, H), dtype=jnp.float32)
    behavior3 = jax.random.normal(k_b3, (B3, H), dtype=jnp.float32)

    outs3 = cross_modal_attention(text3, img3, behavior3, w, b, scales)
    outs3 = jax.block_until_ready(outs3)
    _check(outs3, _reference(text3, img3, behavior3, w, b, scales))

    print("KERNEL_OK")
</pallas_src>

<mosaic_0001>
module attributes {stable_mosaic.version = 11 : i64} {
  func.func @_cross_modal_kernel(%arg0: i32, %arg1: memref<8x32xf32, #tpu.memory_space<vmem>>, %arg2: memref<8x32xf32, #tpu.memory_space<vmem>>, %arg3: memref<8x32xf32, #tpu.memory_space<vmem>>, %arg4: memref<32x3xf32, #tpu.memory_space<vmem>>, %arg5: memref<32x3xf32, #tpu.memory_space<vmem>>, %arg6: memref<32x3xf32, #tpu.memory_space<vmem>>, %arg7: memref<1x3xf32, #tpu.memory_space<vmem>>, %arg8: memref<3xf32, #tpu.memory_space<smem>>, %arg9: memref<8x32xf32, #tpu.memory_space<vmem>>, %arg10: memref<8x32xf32, #tpu.memory_space<vmem>>, %arg11: memref<8x32xf32, #tpu.memory_space<vmem>>, %arg12: memref<8x3xf32, #tpu.memory_space<vmem>>) attributes {dimension_semantics = [#tpu.dimension_semantics<parallel>], iteration_bounds = array<i64: 1>, scalar_prefetch = 0 : i64, scratch_operands = 0 : i64, tpu.core_type = #tpu.core_type<tc>, window_params = [{transform_indices = @transform_0, window_bounds = array<i64: 8, 32>}, {transform_indices = @transform_1, window_bounds = array<i64: 8, 32>}, {transform_indices = @transform_2, window_bounds = array<i64: 8, 32>}, {pipeline_mode = #tpu.pipeline_mode<synchronous>, transform_indices = @transform_3, window_bounds = array<i64: 32, 3>}, {pipeline_mode = #tpu.pipeline_mode<synchronous>, transform_indices = @transform_4, window_bounds = array<i64: 32, 3>}, {pipeline_mode = #tpu.pipeline_mode<synchronous>, transform_indices = @transform_5, window_bounds = array<i64: 32, 3>}, {pipeline_mode = #tpu.pipeline_mode<synchronous>, transform_indices = @transform_6, window_bounds = array<i64: 1, 3>}, {transform_indices = @transform_7, window_bounds = array<i64: 3>}, {transform_indices = @transform_8, window_bounds = array<i64: 8, 32>}, {transform_indices = @transform_9, window_bounds = array<i64: 8, 32>}, {transform_indices = @transform_10, window_bounds = array<i64: 8, 32>}, {transform_indices = @transform_11, window_bounds = array<i64: 8, 3>}]} {
    %c0 = arith.constant 0 : index
    %c0_0 = arith.constant 0 : index
    %0 = vector.load %arg1[%c0, %c0_0] : memref<8x32xf32, #tpu.memory_space<vmem>>, vector<8x32xf32>
    %c0_1 = arith.constant 0 : index
    %c0_2 = arith.constant 0 : index
    %1 = vector.load %arg2[%c0_1, %c0_2] : memref<8x32xf32, #tpu.memory_space<vmem>>, vector<8x32xf32>
    %c0_3 = arith.constant 0 : index
    %c0_4 = arith.constant 0 : index
    %2 = vector.load %arg3[%c0_3, %c0_4] : memref<8x32xf32, #tpu.memory_space<vmem>>, vector<8x32xf32>
    %c0_5 = arith.constant 0 : index
    %c0_6 = arith.constant 0 : index
    %3 = vector.load %arg4[%c0_5, %c0_6] : memref<32x3xf32, #tpu.memory_space<vmem>>, vector<32x3xf32>
    %cst = arith.constant dense<0.000000e+00> : vector<8x3xf32>
    %4 = tpu.matmul %0, %3, %cst {dimension_numbers = #tpu.dot_dimension_numbers<[1], [0], [0], [1], [0, 0, 1, 1], [], []>} : vector<8x32xf32>, vector<32x3xf32>, vector<8x3xf32> -> vector<8x3xf32>
    %c0_7 = arith.constant 0 : index
    %c0_8 = arith.constant 0 : index
    %5 = vector.load %arg5[%c0_7, %c0_8] : memref<32x3xf32, #tpu.memory_space<vmem>>, vector<32x3xf32>
    %cst_9 = arith.constant dense<0.000000e+00> : vector<8x3xf32>
    %6 = tpu.matmul %1, %5, %cst_9 {dimension_numbers = #tpu.dot_dimension_numbers<[1], [0], [0], [1], [0, 0, 1, 1], [], []>} : vector<8x32xf32>, vector<32x3xf32>, vector<8x3xf32> -> vector<8x3xf32>
    %7 = arith.addf %4, %6 : vector<8x3xf32>
    %c0_10 = arith.constant 0 : index
    %c0_11 = arith.constant 0 : index
    %8 = vector.load %arg6[%c0_10, %c0_11] : memref<32x3xf32, #tpu.memory_space<vmem>>, vector<32x3xf32>
    %cst_12 = arith.constant dense<0.000000e+00> : vector<8x3xf32>
    %9 = tpu.matmul %2, %8, %cst_12 {dimension_numbers = #tpu.dot_dimension_numbers<[1], [0], [0], [1], [0, 0, 1, 1], [], []>} : vector<8x32xf32>, vector<32x3xf32>, vector<8x3xf32> -> vector<8x3xf32>
    %10 = arith.addf %7, %9 : vector<8x3xf32>
    %c0_13 = arith.constant 0 : index
    %c0_14 = arith.constant 0 : index
    %11 = vector.load %arg7[%c0_13, %c0_14] : memref<1x3xf32, #tpu.memory_space<vmem>>, vector<1x3xf32>
    %12 = vector.broadcast %11 : vector<1x3xf32> to vector<8x3xf32>
    %13 = arith.addf %10, %12 : vector<8x3xf32>
    %cst_15 = arith.constant dense<0xFF800000> : vector<8xf32>
    %14 = vector.multi_reduction <maximumf>, %13, %cst_15 [1] : vector<8x3xf32> to vector<8xf32>
    %15 = vector.shape_cast %14 : vector<8xf32> to vector<8x1xf32>
    %16 = vector.broadcast %15 : vector<8x1xf32> to vector<8x3xf32>
    %17 = arith.subf %13, %16 : vector<8x3xf32>
    %18 = math.exp %17 : vector<8x3xf32>
    %cst_16 = arith.constant dense<0.000000e+00> : vector<8xf32>
    %19 = vector.multi_reduction <add>, %18, %cst_16 [1] : vector<8x3xf32> to vector<8xf32>
    %20 = vector.shape_cast %19 : vector<8xf32> to vector<8x1xf32>
    %21 = tpu.reciprocal %20 {approx = true} : vector<8x1xf32> -> vector<8x1xf32>
    %22 = vector.broadcast %21 : vector<8x1xf32> to vector<8x3xf32>
    %23 = arith.mulf %18, %22 : vector<8x3xf32>
    %c0_17 = arith.constant 0 : index
    %c0_18 = arith.constant 0 : index
    %24 = vector.load %arg12[%c0_17, %c0_18] : memref<8x3xf32, #tpu.memory_space<vmem>>, vector<8x3xf32>
    tpu.vector_store %arg12[%c0_17, %c0_18], %23 {strides = array<i32>} : memref<8x3xf32, #tpu.memory_space<vmem>>, vector<8x3xf32>,
    %c0_19 = arith.constant 0 : index
    %25 = memref.load %arg8[%c0_19] : memref<3xf32, #tpu.memory_space<smem>>
    %c1 = arith.constant 1 : index
    %26 = memref.load %arg8[%c1] : memref<3xf32, #tpu.memory_space<smem>>
    %c2 = arith.constant 2 : index
    %27 = memref.load %arg8[%c2] : memref<3xf32, #tpu.memory_space<smem>>
    %28 = vector.extract_strided_slice %23 {offsets = [0, 0], sizes = [8, 1], strides = [1, 1]} : vector<8x3xf32> to vector<8x1xf32>
    %29 = vector.broadcast %25 : f32 to vector<8x1xf32>
    %30 = arith.mulf %28, %29 : vector<8x1xf32>
    %31 = vector.broadcast %30 : vector<8x1xf32> to vector<8x32xf32>
    %32 = arith.mulf %0, %31 : vector<8x32xf32>
    %c0_20 = arith.constant 0 : index
    %c0_21 = arith.constant 0 : index
    %33 = vector.load %arg9[%c0_20, %c0_21] : memref<8x32xf32, #tpu.memory_space<vmem>>, vector<8x32xf32>
    tpu.vector_store %arg9[%c0_20, %c0_21], %32 {strides = array<i32>} : memref<8x32xf32, #tpu.memory_space<vmem>>, vector<8x32xf32>,
    %34 = vector.extract_strided_slice %23 {offsets = [0, 1], sizes = [8, 1], strides = [1, 1]} : vector<8x3xf32> to vector<8x1xf32>
    %35 = vector.broadcast %26 : f32 to vector<8x1xf32>
    %36 = arith.mulf %34, %35 : vector<8x1xf32>
    %37 = vector.broadcast %36 : vector<8x1xf32> to vector<8x32xf32>
    %38 = arith.mulf %1, %37 : vector<8x32xf32>
    %c0_22 = arith.constant 0 : index
    %c0_23 = arith.constant 0 : index
    %39 = vector.load %arg10[%c0_22, %c0_23] : memref<8x32xf32, #tpu.memory_space<vmem>>, vector<8x32xf32>
    tpu.vector_store %arg10[%c0_22, %c0_23], %38 {strides = array<i32>} : memref<8x32xf32, #tpu.memory_space<vmem>>, vector<8x32xf32>,
    %40 = vector.extract_strided_slice %23 {offsets = [0, 2], sizes = [8, 1], strides = [1, 1]} : vector<8x3xf32> to vector<8x1xf32>
    %41 = vector.broadcast %27 : f32 to vector<8x1xf32>
    %42 = arith.mulf %40, %41 : vector<8x1xf32>
    %43 = vector.broadcast %42 : vector<8x1xf32> to vector<8x32xf32>
    %44 = arith.mulf %2, %43 : vector<8x32xf32>
    %c0_24 = arith.constant 0 : index
    %c0_25 = arith.constant 0 : index
    %45 = vector.load %arg11[%c0_24, %c0_25] : memref<8x32xf32, #tpu.memory_space<vmem>>, vector<8x32xf32>
    tpu.vector_store %arg11[%c0_24, %c0_25], %44 {strides = array<i32>} : memref<8x32xf32, #tpu.memory_space<vmem>>, vector<8x32xf32>,
    return
  }
  func.func @transform_0(%arg0: i32) -> (i32, i32) {
    %c0_i32 = arith.constant 0 : i32
    %c0_i32_0 = arith.constant 0 : i32
    return %arg0, %c0_i32 : i32, i32
  }
  func.func @transform_1(%arg0: i32) -> (i32, i32) {
    %c0_i32 = arith.constant 0 : i32
    %c0_i32_0 = arith.constant 0 : i32
    return %arg0, %c0_i32 : i32, i32
  }
  func.func @transform_2(%arg0: i32) -> (i32, i32) {
    %c0_i32 = arith.constant 0 : i32
    %c0_i32_0 = arith.constant 0 : i32
    return %arg0, %c0_i32 : i32, i32
  }
  func.func @transform_3(%arg0: i32) -> (i32, i32) {
    %c0_i32 = arith.constant 0 : i32
    %c0_i32_0 = arith.constant 0 : i32
    %c0_i32_1 = arith.constant 0 : i32
    return %c0_i32, %c0_i32_0 : i32, i32
  }
  func.func @transform_4(%arg0: i32) -> (i32, i32) {
    %c0_i32 = arith.constant 0 : i32
    %c0_i32_0 = arith.constant 0 : i32
    %c0_i32_1 = arith.constant 0 : i32
    return %c0_i32, %c0_i32_0 : i32, i32
  }
  func.func @transform_5(%arg0: i32) -> (i32, i32) {
    %c0_i32 = arith.constant 0 : i32
    %c0_i32_0 = arith.constant 0 : i32
    %c0_i32_1 = arith.constant 0 : i32
    return %c0_i32, %c0_i32_0 : i32, i32
  }
  func.func @transform_6(%arg0: i32) -> (i32, i32) {
    %c0_i32 = arith.constant 0 : i32
    %c0_i32_0 = arith.constant 0 : i32
    %c0_i32_1 = arith.constant 0 : i32
    return %c0_i32, %c0_i32_0 : i32, i32
  }
  func.func @transform_7(%arg0: i32) -> i32 {
    %c0_i32 = arith.constant 0 : i32
    %c0_i32_0 = arith.constant 0 : i32
    return %c0_i32 : i32
  }
  func.func @transform_8(%arg0: i32) -> (i32, i32) {
    %c0_i32 = arith.constant 0 : i32
    %c0_i32_0 = arith.constant 0 : i32
    return %arg0, %c0_i32 : i32, i32
  }
  func.func @transform_9(%arg0: i32) -> (i32, i32) {
    %c0_i32 = arith.constant 0 : i32
    %c0_i32_0 = arith.constant 0 : i32
    return %arg0, %c0_i32 : i32, i32
  }
  func.func @transform_10(%arg0: i32) -> (i32, i32) {
    %c0_i32 = arith.constant 0 : i32
    %c0_i32_0 = arith.constant 0 : i32
    return %arg0, %c0_i32 : i32, i32
  }
  func.func @transform_11(%arg0: i32) -> (i32, i32) {
    %c0_i32 = arith.constant 0 : i32
    %c0_i32_0 = arith.constant 0 : i32
    return %arg0, %c0_i32 : i32, i32
  }
}

</mosaic_0001>

<bundles_post_ra>
// kernel: tpu_custom_call.1
= control target key start
LH: loop header
LB: loop body
LE: loop exit
PB: predicated region body
PF: predicated region fallthrough
CT: control target
= control target key end

     0   :  { %17 = vsyncpa [#allocation4], 0  ;;  %s488_s0 = inlined_call_operand.vmem [shape: f32[8,32], index: 0, kind: input, shape index: {}]   ;;  %s489_s1 = inlined_call_operand.vmem [shape: f32[8,32], index: 1, kind: input, shape index: {}]   ;;  %s490_s2 = inlined_call_operand.vmem [shape: f32[8,32], index: 2, kind: input, shape index: {}]   ;;  %s491_s3 = inlined_call_operand.vmem [shape: f32[32,3], index: 3, kind: input, shape index: {}]   ;;  %s492_s4 = inlined_call_operand.vmem [shape: f32[32,3], index: 4, kind: input, shape index: {}]   ;;  %s493_s5 = inlined_call_operand.vmem [shape: f32[32,3], index: 5, kind: input, shape index: {}]   ;;  %s494_s6 = inlined_call_operand.vmem [shape: f32[1,3], index: 6, kind: input, shape index: {}]   ;;  %s495_s7 = inlined_call_operand.vmem [shape: f32[3], index: 7, kind: input, shape index: {}]   ;;  %s496_s8 = inlined_call_operand.hbm [shape: f32[8,32], index: 8, kind: output, shape index: {0}]   ;;  %s497_s9 = inlined_call_operand.hbm [shape: f32[8,32], index: 9, kind: output, shape index: {1}]   ;;  %s498_s10 = inlined_call_operand.hbm [shape: f32[8,32], index: 10, kind: output, shape index: {2}]   ;;  %s499_s11 = inlined_call_operand.vmem [shape: f32[8,3], index: 11, kind: output, shape index: {3}]  }
   0x1   :  { %18 = vsyncpa [#allocation3], 0 }
   0x2   :  { %19 = vsyncpa [#allocation7], 0  ;;  %s39_s19 = sshll.u32 %s495_s7, 4  ;;  %s345_s20 = smov [#allocation2]   ;;  %s40_s19 = int_to_ptr.vmem [resolvable:$true] %s39_s19 }
   0x3   :  { %42 = dma.vmem_to_smem %s40_s19, 16, %s345_s20, [#allocation4]  }
   0x4   :  { %339 = dma.done.wait [#allocation4], 16  }
   0x5   :  { %340 = vsyncadd [#allocation4], 4294967280 }
   0x6   :  { %47 = sfence }
   0x7   :  { %v109_v0 = vld [vmem:[%s493_s5 + $0x18] sm:$0xff]  ;;  %v108_v1 = vld [vmem:[%s493_s5 + $0x10] sm:$0xff]  ;;  %v107_v5 = vld [vmem:[%s493_s5 + $0x8] sm:$0xff]  ;;  %vm59_vm0 = vcmask 261120   ;;  %vm139_vm1 = vcmask 23552   ;;  %v346_v28 = vmov 2  }
   0x8   :  { %v58_v2 = vld [vmem:[%s492_s4 + $0x18] sm:$0xff]  ;;  %125 = vmatpush.msra.mxu2 %v109_v0  ;;  %v57_v4 = vld [vmem:[%s492_s4 + $0x10] sm:$0xff]  ;;  %v56_v7 = vld [vmem:[%s492_s4 + $0x8] sm:$0xff]  ;;  %248 = vset.pattern.permute.xlu2 %v346_v28  ;;  %v347_v29 = vmov 1   ;;  %v348_v39 = vmov 0   ;;  %s349_s30 = smov [#allocation6]  }
   0x9   :  { %75 = vmatpush.msra.mxu0 %v58_v2  ;;  %v54_v3 = vld [vmem:[%s491_s3 + $0x18] sm:$0xff]  ;;  %v53_v6 = vld [vmem:[%s491_s3 + $0x10] sm:$0xff]  ;;  %v52_v8 = vld [vmem:[%s491_s3 + $0x8] sm:$0xff]  ;;  %246 = vset.pattern.permute.xlu1 %v347_v29  ;;  %s198_s12 = sshll.u32 %s349_s30, 4  ;;  %s200_s15 = sshll.u32 %s497_s9, 4  ;;  %s199_s12 = int_to_ptr.vmem [resolvable:$true] %s198_s12  ;;  %s201_s15 = int_to_ptr.hbm [resolvable:$true] %s200_s15 }
   0xa   :  { %98 = vmatpush.msra.mxu1 %v54_v3  ;;  %126 = vmatpush.msra.mxu2 %v108_v1  ;;  %v106_v9 = vld [vmem:[%s493_s5] sm:$0xff]  ;;  %s211_s19 = sshll.u32 %s498_s10, 4  ;;  %s351_s20 = smov [#allocation5]   ;;  %s212_s19 = int_to_ptr.hbm [resolvable:$true] %s211_s19 }
   0xb   :  { %76 = vmatpush.msra.mxu0 %v57_v4  ;;  %v55_v10 = vld [vmem:[%s492_s4] sm:$0xff]  ;;  %249 = vset.pattern.permute.xlu0 %v346_v28  ;;  %s152_s4 = sld [smem:[#allocation2]]  ;;  %s187_s21 = sshll.u32 %s351_s20, 4  ;;  %s188_s21 = int_to_ptr.vmem [resolvable:$true] %s187_s21 }
   0xc   :  { %99 = vmatpush.msra.mxu1 %v53_v6  ;;  %127 = vmatpush.msra.mxu2 %v107_v5  ;;  %v50_v11 = vld [vmem:[%s490_s2] sm:$0xff]  ;;  %s189_s23 = sshll.u32 %s496_s8, 4  ;;  %s190_s23 = int_to_ptr.hbm [resolvable:$true] %s189_s23 }
   0xd   :  { %77 = vmatpush.msra.mxu0 %v56_v7  ;;  %v51_v12 = vld [vmem:[%s491_s3] sm:$0xff]  ;;  %s237_s3 = sld [smem:[#allocation2 + $0x1]] }
   0xe   :  { %100 = vmatpush.msra.mxu1 %v52_v8  ;;  %v49_v13 = vld [vmem:[%s489_s1] sm:$0xff]  ;;  %128 = vmatpush.msra.mxu2 %v106_v9 }
   0xf   :  { %v460_v14 = vld [vmem:[%s488_s0] sm:$0xff]  ;;  %78 = vmatpush.msra.mxu0 %v55_v10  ;;  %236 = vmatmul.msk.f32.vlgmr.msra.gmra.mxu2 %vm59_vm0, %v50_v11  ;;  %s238_s0 = sld [smem:[#allocation2 + $0x2]] }
  0x10   :  { %101 = vmatpush.msra.mxu1 %v51_v12  ;;  %234 = vmatmul.msk.f32.vlgmr.msra.gmra.mxu0 %vm59_vm0, %v49_v13  ;;  %v250_v18 = vld [vmem:[%s494_s6] ss:$0 sm:$0xff] }
  0x11   :  { %235 = vmatmul.msk.f32.vlgmr.msra.gmra.mxu1 %vm59_vm0, %v460_v14  ;;  %v155_v37 = vstv %s152_s4 }
  0x13   :  { %v164_v33 = vstv %s237_s3 }
  0x15   :  { %v173_v32 = vstv %s238_s0 }
  0x8d   :  { %v80_v15 = vpop.f32.mrf.mxu0 }
  0x8e   :  { %v103_v16 = vpop.f32.mrf.mxu1 }
  0x8f   :  { %v104_v17 = vadd.f32 %v103_v16, %v80_v15 }
  0x92   :  { %v130_v19 = vpop.f32.mrf.mxu2 }
  0x93   :  { %v133_v20 = vadd.f32 %v130_v19, %v104_v17 }
  0x95   :  { %v138_v21 = vadd.f32 %v250_v18, %v133_v20 }
  0x97   :  { %v140_v22 = vsel %vm139_vm1, %v138_v21, -inf }
  0x98   :  { %141 = vmax.xlane.f32.xlu0 %v140_v22 }
 0x10b   :  { %v142_v23 = vpop.xlane.xlu0 %141 }
 0x10c   :  { %v143_v24 = vsub.f32 %v138_v21, %v142_v23 }
 0x10e   :  { %v144_v25 = vmul.f32 1.442695, %v143_v24 }
 0x110   :  { %251 = vpow2.f32 %v144_v25 }
 0x116   :  { %v252_v26 = vpop.eup %251 }
 0x117   :  { %v146_v27 = vsel %vm139_vm1, %v252_v26, 0.0 }
 0x118   :  { %147 = vadd.xlane.f32.xlu0 %v146_v27 }
 0x18b   :  { %v148_v30 = vpop.xlane.xlu0 %147 }
 0x18c   :  { %253 = vrcp.f32 %v148_v30 }
 0x192   :  { %v254_v31 = vpop.eup %253 }
 0x193   :  { %v150_v34 = vmul.f32 %v254_v31, %v252_v26 }
 0x195   :  { %151 = vst.msk [vmem:[%s499_s11] sm:$0xff] %vm139_vm1, %v150_v34  ;;  %v174_v35 = vmul.f32 %v173_v32, %v150_v34  ;;  %v165_v36 = vmul.f32 %v164_v33, %v150_v34  ;;  %v156_v38 = vmul.f32 %v155_v37, %v150_v34  ;;  %s350_s11 = smov [#allocation8]  }
 0x196   :  { %s209_s16 = sshll.u32 %s350_s11, 4  ;;  %s210_s16 = int_to_ptr.vmem [resolvable:$true] %s209_s16 }
 0x197   :  { %177 = vperm.xlu2 %248, %v174_v35   ;;  %168 = vperm.xlu1 %246, %v165_v36  }
 0x19f   :  { %247 = vset.pattern.permute.xlu1 %v348_v39 }
 0x1a0   :  { %159 = vperm.xlu1 %247, %v156_v38  }
 0x1f1   :  { %v178_v40 = vpop.permute.xlu2 %177 }
 0x1f2   :  { %v180_v41 = vmul.f32 %v178_v40, %v50_v11 }
 0x1f4   :  { %181 = vst.msk [vmem:[#allocation8] sm:$0xff] %vm59_vm0, %v180_v41 }
 0x209   :  { %v169_v42 = vpop.permute.xlu1 %168 }
 0x20a   :  { %v171_v43 = vmul.f32 %v169_v42, %v49_v13 }
 0x20c   :  { %172 = vst.msk [vmem:[#allocation6] sm:$0xff] %vm59_vm0, %v171_v43 }
 0x20d   :  { %203 = dma.vmem_to_hbm [thread:$0]  %s199_s12, 128, %s201_s15, [#allocation7]  }
 0x20e   :  { %214 = dma.vmem_to_hbm [thread:$0]  %s210_s16, 128, %s212_s19, [#allocation7]  }
 0x212   :  { %v160_v44 = vpop.permute.xlu1 %159 }
 0x213   :  { %v162_v45 = vmul.f32 %v160_v44, %v460_v14 }
 0x215   :  { %163 = vst.msk [vmem:[#allocation5] sm:$0xff] %vm59_vm0, %v162_v45 }
 0x216   :  { %192 = dma.vmem_to_hbm [thread:$0]  %s188_s21, 128, %s190_s23, [#allocation3]  }
 0x217   :  { %341 = dma.done.wait [#allocation3], 128  }
 0x218   :  { %342 = vsyncadd [#allocation3], 4294967168 }
 0x219   :  { %343 = dma.done.wait [#allocation7], 256  }
 0x21a   :  { %344 = vsyncadd [#allocation7], 4294967040 }
 0x21b   :  { %231 = vsyncpa [#allocation3], 1 }
 0x21c   :  { %232 = vsyncpa [#allocation7], 1 }
 0x21d   :  { %233 = vsyncpa [#allocation4], 1 }

</bundles_post_ra>
